<compile_context>
chip_gen: v7x
topology: tpu7x:2x2x1
jax: 0.10.0
libtpu: 0.0.40
codegen_flags: <defaults>
</compile_context>

<pallas_src>
import jax
import jax.numpy as jnp
from jax.experimental import pallas as pl
from jax.experimental.pallas import tpu as pltpu


def _round_up(x, m):
    return ((x + m - 1) // m) * m


def qnet_kernel(x_ref, w1_ref, b1_ref, w2_ref, b2_ref, w3_ref, b3_ref, o_ref):
    # Layer 1: single merged matmul over concatenated [state, action] features
    # (K = s_dim + a_dim).  bf16 operands, f32 MXU accumulation.
    x = x_ref[...].astype(jnp.bfloat16)
    h1 = jnp.dot(x, w1_ref[...], preferred_element_type=jnp.float32) + b1_ref[...]
    h1 = jnp.maximum(h1, 0.0)

    # Layer 2: (tb, 256) @ (256, 256), bf16 operands, f32 accumulation.
    h2 = (jnp.dot(h1.astype(jnp.bfloat16), w2_ref[...],
                  preferred_element_type=jnp.float32) + b2_ref[...])
    h2 = jnp.maximum(h2, 0.0)

    # Output head (N=1): VPU multiply + lane reduction instead of a near-empty
    # MXU matmul.  w3_ref is the pre-transposed (1, 256) f32 row; b3 is an
    # SMEM scalar.
    o_ref[...] = jnp.sum(h2 * w3_ref[...], axis=-1, keepdims=True) + b3_ref[0, 0]


def qnet_forward(state, action, params, tile_b=2048):
    """state: (B, s_dim), action: (B, a_dim)  ->  q: (B, 1) float32."""
    w1, b1, w2, b2, w3_row, b3 = params

    # Wrapper-side concat (tiny (B, s+a) copy) so layer 1 is ONE matmul.
    x = jnp.concatenate([state, action], axis=1).astype(jnp.float32)
    B, d_in = x.shape
    H1 = w1.shape[1]
    H2 = w2.shape[1]

    # Tile selection:
    #  * tiny batches -> single full-batch block (block dim == full dim is legal)
    #  * otherwise: >= 2 grid steps (so v7x's 2nd TensorCore isn't idle),
    #    capped at tile_b, tb a multiple of 8.  Last block may be ragged;
    #    Pallas clips out-of-bounds output writes.
    if B <= 16:
        tb = B
    else:
        tb = min(tile_b, _round_up(pl.cdiv(B, 2), 8))
    grid = (pl.cdiv(B, tb),)

    flops = 2 * B * (d_in * H1 + H1 * H2 + H2)
    bytes_accessed = (4 * B * (d_in + 1)              # x in, q out (f32)
                      + 2 * (d_in * H1 + H1 * H2)     # bf16 weights
                      + 4 * (H1 + H2 + H2 + 1))       # f32 biases + w3 row

    out = pl.pallas_call(
        qnet_kernel,
        out_shape=jax.ShapeDtypeStruct((B, 1), jnp.float32),
        grid=grid,
        in_specs=[
            pl.BlockSpec((tb, d_in), lambda i: (i, 0)),        # x tile (f32)
            pl.BlockSpec((d_in, H1), lambda i: (0, 0)),        # W1 (bf16, resident)
            pl.BlockSpec((1, H1),    lambda i: (0, 0)),        # b1 (f32)
            pl.BlockSpec((H1, H2),   lambda i: (0, 0)),        # W2 (bf16, resident)
            pl.BlockSpec((1, H2),    lambda i: (0, 0)),        # b2 (f32)
            pl.BlockSpec((1, H2),    lambda i: (0, 0)),        # w3 row (f32)
            pl.BlockSpec(memory_space=pltpu.MemorySpace.SMEM), # b3 scalar
        ],
        out_specs=pl.BlockSpec((tb, 1), lambda i: (i, 0)),
        compiler_params=pltpu.CompilerParams(
            dimension_semantics=("parallel",),
            vmem_limit_bytes=48 * 1024 * 1024),
        cost_estimate=pl.CostEstimate(
            flops=flops, transcendentals=0, bytes_accessed=bytes_accessed),
    )(x, w1, b1, w2, b2, w3_row, b3)

    return out


def init_qnet_params(key, s_dim, a_dim, hidden=(256, 256)):
    """Xavier-ish init matching the torch module's shapes.

    Returns (w1, b1, w2, b2, w3_row, b3):
      w1: (s_dim+a_dim, 256) bf16, w2: (256, 256) bf16   -- MXU operands
      b1, b2: (1, 256) f32
      w3_row: (1, 256) f32  -- W3 transposed (VPU head)
      b3: (1, 1) f32        -- SMEM scalar
    """
    d_in = s_dim + a_dim
    dims = [d_in, hidden[0], hidden[1], 1]
    keys = jax.random.split(key, len(dims) - 1)

    ws, bs = [], []
    for k, (fi, fo) in zip(keys, zip(dims[:-1], dims[1:])):
        scale = jnp.sqrt(2.0 / (fi + fo)).astype(jnp.float32)
        ws.append(jax.random.normal(k, (fi, fo), dtype=jnp.float32) * scale)
        bs.append(jnp.zeros((1, fo), dtype=jnp.float32))

    w1, w2, w3 = ws
    b1, b2, b3 = bs
    return (w1.astype(jnp.bfloat16), b1,
            w2.astype(jnp.bfloat16), b2,
            w3.T.astype(jnp.float32),      # (1, 256)
            b3.reshape(1, 1))              # SMEM scalar


def qnet_reference(state, action, params, mixed_precision=True):
    """Pure-JAX reference.

    mixed_precision=True mirrors the kernel's bf16 operand rounding exactly
    (bf16 products are exact once operands are bf16, accumulation stays f32),
    so it can be compared at tight tolerance.  mixed_precision=False is the
    plain f32 forward of the original torch module.
    """
    w1, b1, w2, b2, w3_row, b3 = params
    w1f = w1.astype(jnp.float32)
    w2f = w2.astype(jnp.float32)
    x = jnp.concatenate([state, action], axis=1).astype(jnp.float32)
    if mixed_precision:
        x = x.astype(jnp.bfloat16).astype(jnp.float32)
    h1 = jnp.maximum(x @ w1f + b1, 0.0)
    if mixed_precision:
        h1 = h1.astype(jnp.bfloat16).astype(jnp.float32)
    h2 = jnp.maximum(h1 @ w2f + b2, 0.0)
    return jnp.sum(h2 * w3_row, axis=-1, keepdims=True) + b3[0, 0]


if __name__ == "__main__":
    key = jax.random.PRNGKey(0)
    k_params, k_state, k_action = jax.random.split(key, 3)

    B, S_DIM, A_DIM = 8, 16, 8
    params = init_qnet_params(k_params, S_DIM, A_DIM)

    state = jax.random.normal(k_state, (B, S_DIM), dtype=jnp.float32)
    action = jax.random.normal(k_action, (B, A_DIM), dtype=jnp.float32)

    # Small-batch path (single grid step, block == full batch).
    q = jax.block_until_ready(qnet_forward(state, action, params))
    assert q.shape == (B, 1)
    q_ref = qnet_reference(state, action, params, mixed_precision=True)
    assert jnp.allclose(q, q_ref, atol=2e-3, rtol=2e-3), \
        "mismatch vs bf16-matched reference (small batch)"
    q_f32 = qnet_reference(state, action, params, mixed_precision=False)
    assert jnp.allclose(q, q_f32, atol=5e-2, rtol=5e-2), \
        "mismatch vs f32 reference (small batch)"

    # Tiled path: batch larger than the tile and non-divisible -> exercises the
    # multi-step grid, resident weights, and the ragged last block (no padding).
    B2 = 300
    k_s2, k_a2 = jax.random.split(jax.random.PRNGKey(1), 2)
    state2 = jax.random.normal(k_s2, (B2, S_DIM), dtype=jnp.float32)
    action2 = jax.random.normal(k_a2, (B2, A_DIM), dtype=jnp.float32)
    q2 = jax.block_until_ready(qnet_forward(state2, action2, params, tile_b=128))
    assert q2.shape == (B2, 1)
    q2_ref = qnet_reference(state2, action2, params, mixed_precision=True)
    assert jnp.allclose(q2, q2_ref, atol=2e-3, rtol=2e-3), \
        "mismatch vs bf16-matched reference (tiled batch)"

    # Default (large-tile) path on the same data: >=2 parallel grid steps.
    q3 = jax.block_until_ready(qnet_forward(state2, action2, params))
    assert jnp.allclose(q3, q2_ref, atol=2e-3, rtol=2e-3), \
        "mismatch vs bf16-matched reference (default tile)"

    print("KERNEL_OK")
</pallas_src>

<mosaic_0001>
module attributes {stable_mosaic.version = 11 : i64} {
  func.func @qnet_kernel(%arg0: i32, %arg1: memref<8x24xf32, #tpu.memory_space<vmem>>, %arg2: memref<24x256xbf16, #tpu.memory_space<vmem>>, %arg3: memref<1x256xf32, #tpu.memory_space<vmem>>, %arg4: memref<256x256xbf16, #tpu.memory_space<vmem>>, %arg5: memref<1x256xf32, #tpu.memory_space<vmem>>, %arg6: memref<1x256xf32, #tpu.memory_space<vmem>>, %arg7: memref<1x1xf32, #tpu.memory_space<smem>>, %arg8: memref<8x1xf32, #tpu.memory_space<vmem>>) attributes {dimension_semantics = [#tpu.dimension_semantics<parallel>], iteration_bounds = array<i64: 1>, scalar_prefetch = 0 : i64, scratch_operands = 0 : i64, tpu.core_type = #tpu.core_type<tc>, window_params = [{transform_indices = @transform_0, window_bounds = array<i64: 8, 24>}, {pipeline_mode = #tpu.pipeline_mode<synchronous>, transform_indices = @transform_1, window_bounds = array<i64: 24, 256>}, {pipeline_mode = #tpu.pipeline_mode<synchronous>, transform_indices = @transform_2, window_bounds = array<i64: 1, 256>}, {pipeline_mode = #tpu.pipeline_mode<synchronous>, transform_indices = @transform_3, window_bounds = array<i64: 256, 256>}, {pipeline_mode = #tpu.pipeline_mode<synchronous>, transform_indices = @transform_4, window_bounds = array<i64: 1, 256>}, {pipeline_mode = #tpu.pipeline_mode<synchronous>, transform_indices = @transform_5, window_bounds = array<i64: 1, 256>}, {transform_indices = @transform_6, window_bounds = array<i64: 1, 1>}, {transform_indices = @transform_7, window_bounds = array<i64: 8, 1>}]} {
    %c0 = arith.constant 0 : index
    %c0_0 = arith.constant 0 : index
    %0 = vector.load %arg1[%c0, %c0_0] : memref<8x24xf32, #tpu.memory_space<vmem>>, vector<8x24xf32>
    %1 = arith.truncf %0 : vector<8x24xf32> to vector<8x24xbf16>
    %c0_1 = arith.constant 0 : index
    %c0_2 = arith.constant 0 : index
    %2 = vector.load %arg2[%c0_1, %c0_2] : memref<24x256xbf16, #tpu.memory_space<vmem>>, vector<24x256xbf16>
    %cst = arith.constant dense<0.000000e+00> : vector<8x256xf32>
    %3 = tpu.matmul %1, %2, %cst {dimension_numbers = #tpu.dot_dimension_numbers<[1], [0], [0], [1], [0, 0, 1, 1], [], []>} : vector<8x24xbf16>, vector<24x256xbf16>, vector<8x256xf32> -> vector<8x256xf32>
    %c0_3 = arith.constant 0 : index
    %c0_4 = arith.constant 0 : index
    %4 = vector.load %arg3[%c0_3, %c0_4] : memref<1x256xf32, #tpu.memory_space<vmem>>, vector<1x256xf32>
    %5 = vector.broadcast %4 : vector<1x256xf32> to vector<8x256xf32>
    %6 = arith.addf %3, %5 : vector<8x256xf32>
    %cst_5 = arith.constant 0.000000e+00 : f32
    %7 = vector.broadcast %cst_5 : f32 to vector<8x256xf32>
    %8 = arith.maximumf %6, %7 : vector<8x256xf32>
    %9 = arith.truncf %8 : vector<8x256xf32> to vector<8x256xbf16>
    %c0_6 = arith.constant 0 : index
    %c0_7 = arith.constant 0 : index
    %10 = vector.load %arg4[%c0_6, %c0_7] : memref<256x256xbf16, #tpu.memory_space<vmem>>, vector<256x256xbf16>
    %cst_8 = arith.constant dense<0.000000e+00> : vector<8x256xf32>
    %11 = tpu.matmul %9, %10, %cst_8 {dimension_numbers = #tpu.dot_dimension_numbers<[1], [0], [0], [1], [0, 0, 1, 1], [], []>} : vector<8x256xbf16>, vector<256x256xbf16>, vector<8x256xf32> -> vector<8x256xf32>
    %c0_9 = arith.constant 0 : index
    %c0_10 = arith.constant 0 : index
    %12 = vector.load %arg5[%c0_9, %c0_10] : memref<1x256xf32, #tpu.memory_space<vmem>>, vector<1x256xf32>
    %13 = vector.broadcast %12 : vector<1x256xf32> to vector<8x256xf32>
    %14 = arith.addf %11, %13 : vector<8x256xf32>
    %cst_11 = arith.constant 0.000000e+00 : f32
    %15 = vector.broadcast %cst_11 : f32 to vector<8x256xf32>
    %16 = arith.maximumf %14, %15 : vector<8x256xf32>
    %c0_12 = arith.constant 0 : index
    %c0_13 = arith.constant 0 : index
    %17 = vector.load %arg6[%c0_12, %c0_13] : memref<1x256xf32, #tpu.memory_space<vmem>>, vector<1x256xf32>
    %18 = vector.broadcast %17 : vector<1x256xf32> to vector<8x256xf32>
    %19 = arith.mulf %16, %18 : vector<8x256xf32>
    %cst_14 = arith.constant dense<0.000000e+00> : vector<8xf32>
    %20 = vector.multi_reduction <add>, %19, %cst_14 [1] : vector<8x256xf32> to vector<8xf32>
    %21 = vector.shape_cast %20 : vector<8xf32> to vector<8x1xf32>
    %c0_15 = arith.constant 0 : index
    %c0_16 = arith.constant 0 : index
    %22 = memref.load %arg7[%c0_15, %c0_16] : memref<1x1xf32, #tpu.memory_space<smem>>
    %23 = vector.broadcast %22 : f32 to vector<8x1xf32>
    %24 = arith.addf %21, %23 : vector<8x1xf32>
    %c0_17 = arith.constant 0 : index
    %c0_18 = arith.constant 0 : index
    %25 = vector.load %arg8[%c0_17, %c0_18] : memref<8x1xf32, #tpu.memory_space<vmem>>, vector<8x1xf32>
    tpu.vector_store %arg8[%c0_17, %c0_18], %24 {strides = array<i32>} : memref<8x1xf32, #tpu.memory_space<vmem>>, vector<8x1xf32>,
    return
  }
  func.func @transform_0(%arg0: i32) -> (i32, i32) {
    %c0_i32 = arith.constant 0 : i32
    %c0_i32_0 = arith.constant 0 : i32
    return %arg0, %c0_i32 : i32, i32
  }
  func.func @transform_1(%arg0: i32) -> (i32, i32) {
    %c0_i32 = arith.constant 0 : i32
    %c0_i32_0 = arith.constant 0 : i32
    %c0_i32_1 = arith.constant 0 : i32
    return %c0_i32, %c0_i32_0 : i32, i32
  }
  func.func @transform_2(%arg0: i32) -> (i32, i32) {
    %c0_i32 = arith.constant 0 : i32
    %c0_i32_0 = arith.constant 0 : i32
    %c0_i32_1 = arith.constant 0 : i32
    return %c0_i32, %c0_i32_0 : i32, i32
  }
  func.func @transform_3(%arg0: i32) -> (i32, i32) {
    %c0_i32 = arith.constant 0 : i32
    %c0_i32_0 = arith.constant 0 : i32
    %c0_i32_1 = arith.constant 0 : i32
    return %c0_i32, %c0_i32_0 : i32, i32
  }
  func.func @transform_4(%arg0: i32) -> (i32, i32) {
    %c0_i32 = arith.constant 0 : i32
    %c0_i32_0 = arith.constant 0 : i32
    %c0_i32_1 = arith.constant 0 : i32
    return %c0_i32, %c0_i32_0 : i32, i32
  }
  func.func @transform_5(%arg0: i32) -> (i32, i32) {
    %c0_i32 = arith.constant 0 : i32
    %c0_i32_0 = arith.constant 0 : i32
    %c0_i32_1 = arith.constant 0 : i32
    return %c0_i32, %c0_i32_0 : i32, i32
  }
  func.func @transform_6(%arg0: i32) -> (i32, i32) {
    %c0_i32 = arith.constant 0 : i32
    %c0_i32_0 = arith.constant 0 : i32
    %c0_i32_1 = arith.constant 0 : i32
    return %c0_i32, %c0_i32_0 : i32, i32
  }
  func.func @transform_7(%arg0: i32) -> (i32, i32) {
    %c0_i32 = arith.constant 0 : i32
    %c0_i32_0 = arith.constant 0 : i32
    return %arg0, %c0_i32 : i32, i32
  }
}

</mosaic_0001>

<bundles_post_ra>
// kernel: tpu_custom_call.1
= control target key start
LH: loop header
LB: loop body
LE: loop exit
PB: predicated region body
PF: predicated region fallthrough
CT: control target
= control target key end

     0   :  { %13 = vsyncpa [#allocation4], 0  ;;  %s700_s0 = inlined_call_operand.hbm [shape: f32[8,24], index: 0, kind: input, shape index: {}]   ;;  %s701_s1 = inlined_call_operand.hbm [shape: bf16[24,256], index: 1, kind: input, shape index: {}]   ;;  %s702_s2 = inlined_call_operand.vmem [shape: f32[1,256], index: 2, kind: input, shape index: {}]   ;;  %s703_s3 = inlined_call_operand.hbm [shape: bf16[256,256], index: 3, kind: input, shape index: {}]   ;;  %s704_s4 = inlined_call_operand.vmem [shape: f32[1,256], index: 4, kind: input, shape index: {}]   ;;  %s705_s5 = inlined_call_operand.vmem [shape: f32[1,256], index: 5, kind: input, shape index: {}]   ;;  %s706_s6 = inlined_call_operand.<no memory space> [shape: f32[1,1], index: 6, kind: input, shape index: {}]   ;;  %s707_s7 = inlined_call_operand.vmem [shape: f32[8,1], index: 7, kind: output, shape index: {}]  }
   0x1   :  { %14 = vsyncpa [#allocation6], 0  ;;  %s597_s24 = smov [#allocation5]   ;;  %s527_s28 = scalar_lea.hbm %s701_s1, 384 }
   0x2   :  { %s30_s25 = sshll.u32 %s597_s24, 4  ;;  %p528_p0 = scmp.ne.s32.totalorder %s701_s1, %s527_s28  ;;  %s31_s25 = int_to_ptr.vmem [resolvable:$true] %s30_s25 }
   0x3   :  { %p531_p1 = scmp.lt.u32.totalorder %s527_s28, %s701_s1 }
   0x5   :  { %p533_p2 = pnand %p531_p1, %p528_p0 }
   0x7   :  { %536 = shalt.err (!%p533_p2)
}
   0x8   :  { %s537_s10 = scalar_lea.vmem %s31_s25, 384  ;;  %p542_p4 = scmp.lt.s32.totalorder %s31_s25, %s31_s25 }
   0x9   :  { %p538_p3 = scmp.ne.s32.totalorder %s31_s25, %s537_s10  ;;  %p543_p5 = scmp.lt.s32.totalorder %s537_s10, %s537_s10 }
   0xb   :  { %p544_p6 = por %p543_p5, %p542_p4 }
   0xd   :  { %p545_p7 = pnand %p544_p6, %p538_p3 }
   0xf   :  { %548 = shalt.err (!%p545_p7)
}
  0x10   :  { %s598_s11 = smov 128   ;;  %s599_s12 = smov 8  }
  0x11   :  { %36 = dma.hbm_to_vmem [thread:$0]  %s701_s1, 384, %s31_s25, [#allocation6], %s598_s11, %s598_s11, %s599_s12  }
  0x12   :  { %s600_s15 = smov [#allocation3]   ;;  %s601_s17 = smov [#allocation7]  }
  0x13   :  { %s21_s16 = sshll.u32 %s600_s15, 4  ;;  %s44_s18 = sshll.u32 %s601_s17, 4  ;;  %s22_s16 = int_to_ptr.vmem [resolvable:$true] %s21_s16  ;;  %s45_s18 = int_to_ptr.vmem [resolvable:$true] %s44_s18 }
  0x14   :  { %s549_s21 = scalar_lea.hbm %s700_s0, 128 }
  0x15   :  { %p550_p8 = scmp.ne.s32.totalorder %s700_s0, %s549_s21  ;;  %p553_p9 = scmp.lt.u32.totalorder %s549_s21, %s700_s0 }
  0x17   :  { %p555_p10 = pnand %p553_p9, %p550_p8 }
  0x19   :  { %558 = shalt.err (!%p555_p10)
}
  0x1a   :  { %s559_s1 = scalar_lea.vmem %s22_s16, 128  ;;  %p564_p12 = scmp.lt.s32.totalorder %s22_s16, %s22_s16 }
  0x1b   :  { %p560_p11 = scmp.ne.s32.totalorder %s22_s16, %s559_s1  ;;  %p565_p13 = scmp.lt.s32.totalorder %s559_s1, %s559_s1 }
  0x1d   :  { %p566_p0 = por %p565_p13, %p564_p12 }
  0x1f   :  { %p567_p1 = pnand %p566_p0, %p560_p11 }
  0x21   :  { %570 = shalt.err (!%p567_p1)
}
  0x22   :  { %24 = dma.hbm_to_vmem [thread:$0]  %s700_s0, 128, %s22_s16, [#allocation4]  }
  0x23   :  { %s571_s30 = scalar_lea.hbm %s703_s3, 4096 }
  0x24   :  { %p572_p2 = scmp.ne.s32.totalorder %s703_s3, %s571_s30  ;;  %p575_p3 = scmp.lt.u32.totalorder %s571_s30, %s703_s3 }
  0x26   :  { %p577_p4 = pnand %p575_p3, %p572_p2 }
  0x28   :  { %580 = shalt.err (!%p577_p4)
}
  0x29   :  { %s581_s14 = scalar_lea.vmem %s45_s18, 4096  ;;  %p586_p6 = scmp.lt.s32.totalorder %s45_s18, %s45_s18 }
  0x2a   :  { %p582_p5 = scmp.ne.s32.totalorder %s45_s18, %s581_s14  ;;  %p587_p7 = scmp.lt.s32.totalorder %s581_s14, %s581_s14 }
  0x2c   :  { %p588_p8 = por %p587_p7, %p586_p6 }
  0x2e   :  { %p589_p9 = pnand %p588_p8, %p582_p5 }
  0x30   :  { %592 = shalt.err (!%p589_p9)
}
  0x31   :  { %50 = dma.hbm_to_vmem [thread:$0]  %s703_s3, 4096, %s45_s18, [#allocation6], %s598_s11, %s598_s11, %s599_s12  }
  0x32   :  { %593 = dma.done.wait [#allocation4], 128  }
  0x33   :  { %594 = vsyncadd [#allocation4], 4294967168 }
  0x34   :  { %595 = dma.done.wait [#allocation6], 4480  }
  0x35   :  { %596 = vsyncadd [#allocation6], 4294962816  ;;  %v602_v0 = vmov 0   ;;  %v474_v1 = vld [vmem:[#allocation5 + $0x4] ss:$8 sps:$4 sm:$0xff]   ;;  %v71_v3 = vld [vmem:[#allocation5 + $0x10] sm:$0xff]  ;;  %v74_v41 = vlaneseq }
  0x36   :  { %142 = vmatprep.mubr.bf16.mxu0 %v602_v0  ;;  %v476_v2 = vld [vmem:[#allocation5] ss:$8 sps:$4 sm:$0xff]   ;;  %vm103_vm0 = vcmask 1043456   ;;  %v67_v4 = vld [vmem:[#allocation3] sm:$0xff]  ;;  %110 = vmatprep.subr.bf16.mxu0 %v474_v1  ;;  %v433_v5 = vcombine.high %v71_v3, %v71_v3  ;;  %v432_v6 = vcombine.low %v71_v3, %v71_v3  ;;  %v482_v10 = vld [vmem:[#allocation7 + $0x14] ss:$8 sps:$4 sm:$0xff]  }
  0x37   :  { %v479_v7 = vld [vmem:[#allocation7 + $0x4] ss:$8 sps:$4 sm:$0xff]   ;;  %111 = vmatpush1.bf16.msra.mxu0 %v476_v2  ;;  %v481_v8 = vld [vmem:[#allocation7] ss:$8 sps:$4 sm:$0xff]   ;;  %v484_v11 = vld [vmem:[#allocation7 + $0x10] ss:$8 sps:$4 sm:$0xff]   ;;  %v68_v12 = vpack.c.bf16 %v67_v4, %v67_v4 }
  0x38   :  { %434 = vmatprep.subr.msk.bf16.mxu0 %vm103_vm0, %v433_v5  ;;  %v105_v9 = vsel %vm103_vm0, %v432_v6, 0  ;;  %359 = vmatprep.subr.bf16.mxu1 %v479_v7  ;;  %v485_v13 = vld [vmem:[#allocation7 + $0x24] ss:$8 sps:$4 sm:$0xff]   ;;  %vm99_vm1 = vcmask 195584   ;;  %v487_v14 = vld [vmem:[#allocation7 + $0x20] ss:$8 sps:$4 sm:$0xff]  }
  0x39   :  { %360 = vmatpush1.bf16.msra.mxu1 %v481_v8  ;;  %v488_v15 = vld [vmem:[#allocation7 + $0x34] ss:$8 sps:$4 sm:$0xff]   ;;  %v490_v16 = vld [vmem:[#allocation7 + $0x30] ss:$8 sps:$4 sm:$0xff]   ;;  %v491_v17 = vld [vmem:[#allocation7 + $0x44] ss:$8 sps:$4 sm:$0xff]  }
  0x3a   :  { %361 = vmatprep.subr.bf16.mxu1 %v482_v10  ;;  %v493_v18 = vld [vmem:[#allocation7 + $0x40] ss:$8 sps:$4 sm:$0xff]   ;;  %v494_v19 = vld [vmem:[#allocation7 + $0x54] ss:$8 sps:$4 sm:$0xff]   ;;  %v496_v20 = vld [vmem:[#allocation7 + $0x50] ss:$8 sps:$4 sm:$0xff]  }
  0x3b   :  { %113 = vmatpush1.bf16.msra.mxu0 %v105_v9  ;;  %v497_v21 = vld [vmem:[#allocation7 + $0x64] ss:$8 sps:$4 sm:$0xff]   ;;  %v499_v22 = vld [vmem:[#allocation7 + $0x60] ss:$8 sps:$4 sm:$0xff]   ;;  %v500_v23 = vld [vmem:[#allocation7 + $0x74] ss:$8 sps:$4 sm:$0xff]  }
  0x3c   :  { %v502_v24 = vld [vmem:[#allocation7 + $0x70] ss:$8 sps:$4 sm:$0xff]   ;;  %v503_v25 = vld [vmem:[#allocation7 + $0x84] ss:$8 sps:$4 sm:$0xff]   ;;  %v505_v26 = vld [vmem:[#allocation7 + $0x80] ss:$8 sps:$4 sm:$0xff]  }
  0x3d   :  { %362 = vmatpush1.bf16.msra.mxu1 %v484_v11  ;;  %v506_v27 = vld [vmem:[#allocation7 + $0x94] ss:$8 sps:$4 sm:$0xff]   ;;  %v508_v28 = vld [vmem:[#allocation7 + $0x90] ss:$8 sps:$4 sm:$0xff]   ;;  %v509_v29 = vld [vmem:[#allocation7 + $0xa4] ss:$8 sps:$4 sm:$0xff]   ;;  %v420_v11 = vstv %s706_s6 }
  0x3e   :  { %435 = vmatmul.mubr.msk.bf16.vlgmr.msra.gmra.mrb[0].mxu0 %vm99_vm1, %v68_v12  ;;  %363 = vmatprep.subr.bf16.mxu1 %v485_v13  ;;  %v511_v30 = vld [vmem:[#allocation7 + $0xa0] ss:$8 sps:$4 sm:$0xff]   ;;  %v512_v31 = vld [vmem:[#allocation7 + $0xb4] ss:$8 sps:$4 sm:$0xff]   ;;  %v514_v32 = vld [vmem:[#allocation7 + $0xb0] ss:$8 sps:$4 sm:$0xff]  }
  0x3f   :  { %v515_v33 = vld [vmem:[#allocation7 + $0xc4] ss:$8 sps:$4 sm:$0xff]   ;;  %v517_v34 = vld [vmem:[#allocation7 + $0xc0] ss:$8 sps:$4 sm:$0xff]   ;;  %v518_v35 = vld [vmem:[#allocation7 + $0xd4] ss:$8 sps:$4 sm:$0xff]  }
  0x40   :  { %v520_v36 = vld [vmem:[#allocation7 + $0xd0] ss:$8 sps:$4 sm:$0xff]   ;;  %v521_v37 = vld [vmem:[#allocation7 + $0xe4] ss:$8 sps:$4 sm:$0xff]   ;;  %v523_v38 = vld [vmem:[#allocation7 + $0xe0] ss:$8 sps:$4 sm:$0xff]  }
  0x41   :  { %364 = vmatpush1.bf16.msra.mxu1 %v487_v14  ;;  %v524_v39 = vld [vmem:[#allocation7 + $0xf4] ss:$8 sps:$4 sm:$0xff]   ;;  %v526_v40 = vld [vmem:[#allocation7 + $0xf0] ss:$8 sps:$4 sm:$0xff]   ;;  %v75_v42 = vshrl.u32 %v74_v41, 7  ;;  %vm422_vm2 = vcmask 7168  }
  0x42   :  { %365 = vmatprep.subr.bf16.mxu1 %v488_v15  ;;  %v72_v44 = vld [vmem:[%s702_s2] sm:$0x3] }
  0x43   :  { %v76_v43 = vsub.s32 0, %v75_v42  ;;  %v80_v45 = vsub.s32 1, %v75_v42  ;;  %v187_v58 = vld [vmem:[%s704_s4] sm:$0x3] }
  0x44   :  { %v402_v61 = vld [vmem:[%s705_s5] sm:$0x3] }
  0x45   :  { %366 = vmatpush1.bf16.msra.mxu1 %v490_v16  ;;  %v77_v46 = vrot.slane %v72_v44, %v76_v43  ;;  %v81_v47 = vrot.slane %v72_v44, %v80_v45  ;;  %v192_v59 = vrot.slane %v187_v58, %v76_v43  ;;  %v196_v60 = vrot.slane %v187_v58, %v80_v45 }
  0x46   :  { %367 = vmatprep.subr.bf16.mxu1 %v491_v17  ;;  %v407_v1 = vrot.slane %v402_v61, %v76_v43  ;;  %v411_v4 = vrot.slane %v402_v61, %v80_v45 }
  0x49   :  { %368 = vmatpush1.bf16.msra.mxu1 %v493_v18 }
  0x4a   :  { %369 = vmatprep.subr.bf16.mxu1 %v494_v19 }
  0x4d   :  { %370 = vmatpush1.bf16.msra.mxu1 %v496_v20 }
  0x4e   :  { %371 = vmatprep.subr.bf16.mxu1 %v497_v21 }
  0x51   :  { %372 = vmatpush1.bf16.msra.mxu1 %v499_v22 }
  0x52   :  { %373 = vmatprep.subr.bf16.mxu1 %v500_v23 }
  0x55   :  { %374 = vmatpush1.bf16.msra.mxu1 %v502_v24 }
  0x56   :  { %375 = vmatprep.subr.bf16.mxu1 %v503_v25 }
  0x59   :  { %376 = vmatpush1.bf16.msra.mxu1 %v505_v26 }
  0x5a   :  { %377 = vmatprep.subr.bf16.mxu1 %v506_v27 }
  0x5d   :  { %378 = vmatpush1.bf16.msra.mxu1 %v508_v28 }
  0x5e   :  { %379 = vmatprep.subr.bf16.mxu1 %v509_v29 }
  0x61   :  { %380 = vmatpush1.bf16.msra.mxu1 %v511_v30 }
  0x62   :  { %381 = vmatprep.subr.bf16.mxu1 %v512_v31 }
  0x65   :  { %382 = vmatpush1.bf16.msra.mxu1 %v514_v32 }
  0x66   :  { %383 = vmatprep.subr.bf16.mxu1 %v515_v33 }
  0x69   :  { %384 = vmatpush1.bf16.msra.mxu1 %v517_v34 }
  0x6a   :  { %385 = vmatprep.subr.bf16.mxu1 %v518_v35 }
  0x6d   :  { %386 = vmatpush1.bf16.msra.mxu1 %v520_v36 }
  0x6e   :  { %387 = vmatprep.subr.bf16.mxu1 %v521_v37 }
  0x71   :  { %388 = vmatpush1.bf16.msra.mxu1 %v523_v38 }
  0x72   :  { %389 = vmatprep.subr.bf16.mxu1 %v524_v39 }
  0x75   :  { %390 = vmatpush1.bf16.msra.mxu1 %v526_v40 }
 0x111   :  { %v144_v48 = vpop.f32.mrb[0].mxu0 }
 0x112   :  { %v145_v49 = vadd.f32 %v144_v48, %v77_v46  ;;  %v146_v50 = vpop.f32.mrb[1].mxu0 }
 0x113   :  { %v147_v51 = vadd.f32 %v146_v50, %v81_v47  ;;  %v148_v52 = vpop.f32.mrb[2].mxu0 }
 0x114   :  { %v151_v53 = vmax.f32 %v145_v49, 0.0  ;;  %v149_v54 = vpop.f32.mrb[3].mxu0 }
 0x115   :  { %v152_v55 = vmax.f32 %v147_v51, 0.0 }
 0x116   :  { %v153_v57 = vpack.c.bf16 %v151_v53, %v151_v53 }
 0x117   :  { %v154_v56 = vpack.c.bf16 %v152_v55, %v152_v55 }
 0x119   :  { %391 = vmatprep.mubr.bf16.mxu1 %v154_v56 }
 0x11a   :  { %392 = vmatmul.mubr.bf16.vlgmr.msra.gmra.mrb[0].mxu1 %v153_v57 }
 0x1ed   :  { %v393_v62 = vpop.f32.mrb[0].mxu1 }
 0x1ee   :  { %v394_v63 = vadd.f32 %v393_v62, %v192_v59  ;;  %v395_v0 = vpop.f32.mrb[1].mxu1 }
 0x1ef   :  { %v396_v2 = vadd.f32 %v395_v0, %v196_v60  ;;  %v397_v3 = vpop.f32.mrb[2].mxu1 }
 0x1f0   :  { %v400_v5 = vmax.f32 %v394_v63, 0.0  ;;  %v398_v6 = vpop.f32.mrb[3].mxu1 }
 0x1f1   :  { %v401_v7 = vmax.f32 %v396_v2, 0.0 }
 0x1f2   :  { %v414_v8 = vmul.f32 %v407_v1, %v400_v5 }
 0x1f3   :  { %v415_v9 = vmul.f32 %v411_v4, %v401_v7 }
 0x1f5   :  { %v416_v10 = vadd.f32 %v415_v9, %v414_v8 }
 0x1f7   :  { %417 = vadd.xlane.f32.xlu0 %v416_v10 }
 0x284   :  { %v418_v12 = vpop.xlane.xlu0 %417 }
 0x285   :  { %v421_v13 = vadd.f32 %v420_v11, %v418_v12 }
 0x287   :  { %423 = vst.msk [vmem:[%s707_s7] sm:$0xff] %vm422_vm2, %v421_v13 }
 0x288   :  { %428 = vsyncpa [#allocation4], 1 }
 0x289   :  { %429 = vsyncpa [#allocation6], 1 }

</bundles_post_ra>
